<compile_context>
chip_gen: v7x
topology: tpu7x:2x2x1
jax: 0.10.0
libtpu: 0.0.40
codegen_flags: <defaults>
</compile_context>

<pallas_src>
import functools

import jax
import jax.numpy as jnp
from jax.experimental import pallas as pl
from jax.experimental.pallas import tpu as pltpu


# --------------------------------------------------------------------------
# Kernel
# --------------------------------------------------------------------------
def _mlp_kernel(x_ref, w1_ref, b1_ref, w2_ref, b2_ref, out_ref, *,
                matmul_dtype, ew_dtype):
    """One row-tile of the EG3D MLP head, computed in transposed orientation.

    x_ref  : (tm, C)  point features for this row tile (producer dtype)
    w1_ref : (H, C)   first FC weight (gains folded), PyTorch (out, in) layout
    b1_ref : (H, 1)   f32
    w2_ref : (O, H)   second FC weight, O = 1 + output_dim
    b2_ref : (O, 1)   f32
    out_ref: (O, tm)  row 0 = raw density, rows 1: = sigmoid(color)*1.002-0.001
    """
    x = x_ref[...]
    if matmul_dtype is not None and x.dtype != matmul_dtype:
        x = x.astype(matmul_dtype)          # fused cast; no extra HBM pass

    # ---- FC1 (transposed): h_t[h, m] = sum_c W1[h, c] * x[m, c] -> (H, tm).
    # Contraction on the last dim of both operands is the native MXU
    # "A @ B^T" pattern (same as q@k^T in flash attention); no relayout of the
    # tm-sized x tile, and the result puts tm on the 128-lane axis.
    h = jax.lax.dot_general(
        w1_ref[...], x,
        dimension_numbers=(((1,), (1,)), ((), ())),
        preferred_element_type=jnp.float32,
    )
    h = h + b1_ref[...]                     # (H, 1) broadcast over lanes, f32

    # ---- Softplus (PyTorch default: beta=1, threshold=20) ----
    # bf16 on v6e/v7x (doubles EUP throughput, which is the binding slot),
    # f32 on v5e.
    h = h.astype(ew_dtype)
    thr = jnp.asarray(20.0, ew_dtype)
    h = jnp.where(h > thr, h, jnp.log1p(jnp.exp(jnp.minimum(h, thr))))

    # ---- FC2 (transposed, standard MXU orientation): y_t = W2 @ h_t ----
    if matmul_dtype is not None:
        rhs = h.astype(matmul_dtype)
    else:
        rhs = h.astype(jnp.float32)
    y = jnp.dot(w2_ref[...], rhs, preferred_element_type=jnp.float32)
    y = y + b2_ref[...]                     # (O, 1)

    # ---- Head: two lane-dense stores (no iota/select, no sigmoid on density).
    out_ref[0:1, :] = y[0:1, :].astype(out_ref.dtype)
    col = jax.nn.sigmoid(y[1:, :].astype(ew_dtype)).astype(jnp.float32)
    out_ref[1:, :] = (col * (1.0 + 2.0 * 0.001) - 0.001).astype(out_ref.dtype)

    # TODO(synk): if bundle dumps ever show VMEM spill traffic from the
    # (H, tm) intermediate at tm=8192, chunk the body with an inner
    # lax.fori_loop over 512-1024-lane slices (FC1->softplus->FC2->store per
    # chunk) while keeping the large DMA tile.


# --------------------------------------------------------------------------
# Wrapper
# --------------------------------------------------------------------------
def _round_up(x, m):
    return ((x + m - 1) // m) * m


def _pick_tm(nm, tm_target=8192):
    """Largest tile up to tm_target (multiple of 8*128=1024), clamped so that
    the parallel grid axis has >= 2 tiles whenever N*M allows it (keeps both
    v7x TensorCores busy)."""
    tm_target = max(1024, _round_up(tm_target, 1024))
    two_tile = max(1024, _round_up((nm + 1) // 2, 1024))
    return min(tm_target, two_tile)


def _default_ew_dtype():
    """bf16 elementwise/transcendental math on v6e / v7x (bf16 VPU+EUP);
    f32 everywhere else (v5e has no bf16 VPU/EUP path)."""
    try:
        kind = jax.devices()[0].device_kind.lower()
    except Exception:
        return jnp.float32
    if ("v6" in kind) or ("v7" in kind) or ("7x" in kind):
        return jnp.bfloat16
    return jnp.float32


def mlp_network_forward(point_features, params, *, tm=None,
                        matmul_dtype=jnp.bfloat16, ew_dtype=None,
                        x_buffers=2):
    """point_features: (N, M, C).
    Returns dict(color=(N, M, output_dim), density=(N, M, 1)).

    matmul_dtype: MXU operand dtype (bf16 default; None => f32 matmuls).
                  x's cast is fused inside the kernel; ideally the upstream
                  producer already emits bf16 point features.
    ew_dtype:     elementwise/transcendental dtype (auto: bf16 on v6e/v7x).
    x_buffers:    pipeline depth for the x stream (set 3 on v5e if xprof shows
                  exposed x DMA)."""
    N, M, C = point_features.shape
    NM = N * M

    w1, b1, w2, b2 = params["w1"], params["b1"], params["w2"], params["b2"]
    H = w1.shape[0]
    O = w2.shape[0]                 # 1 + output_dim
    out_dim = O - 1

    if ew_dtype is None:
        ew_dtype = _default_ew_dtype()
    if tm is None:
        tm = _pick_tm(NM)
    n_tiles = pl.cdiv(NM, tm)

    # No pad, no cast of the dominant x stream: cdiv grid + edge-block masking
    # handles the tail, the (optional) bf16 cast happens inside the kernel.
    x2d = point_features.reshape(NM, C)

    if matmul_dtype is not None:
        w1 = w1.astype(matmul_dtype)        # tiny, one-time
        w2 = w2.astype(matmul_dtype)
    else:
        w1 = w1.astype(jnp.float32)
        w2 = w2.astype(jnp.float32)
    b1c = b1.reshape(H, 1).astype(jnp.float32)
    b2c = b2.reshape(O, 1).astype(jnp.float32)

    x_spec_kwargs = {}
    if x_buffers != 2:
        x_spec_kwargs["pipeline_mode"] = pl.Buffered(x_buffers)

    kernel = functools.partial(_mlp_kernel, matmul_dtype=matmul_dtype,
                               ew_dtype=ew_dtype)

    y_t = pl.pallas_call(
        kernel,
        out_shape=jax.ShapeDtypeStruct((O, NM), jnp.float32),
        grid_spec=pltpu.PrefetchScalarGridSpec(
            num_scalar_prefetch=0,
            grid=(n_tiles,),
            in_specs=[
                pl.BlockSpec((tm, C), lambda i: (i, 0), **x_spec_kwargs),  # x rows
                pl.BlockSpec((H, C), lambda i: (0, 0)),    # W1 (resident)
                pl.BlockSpec((H, 1), lambda i: (0, 0)),    # b1
                pl.BlockSpec((O, H), lambda i: (0, 0)),    # W2 (resident)
                pl.BlockSpec((O, 1), lambda i: (0, 0)),    # b2
            ],
            out_specs=pl.BlockSpec((O, tm), lambda i: (0, i)),  # lane-dense
        ),
        compiler_params=pltpu.CompilerParams(
            dimension_semantics=("parallel",)),
    )(x2d, w1, b1c, w2, b2c)

    density = y_t[0].reshape(N, M, 1)
    # TODO(synk): for large output_dim (e.g. 32, the real EG3D decoder) this
    # transpose is a full extra HBM pass over a color array as big as x; have
    # the consumer accept channel-major (out_dim, N, M) or fuse the transpose.
    color = y_t[1:].T.reshape(N, M, out_dim)
    return {"color": color, "density": density}


# --------------------------------------------------------------------------
# Parameter init (FullyConnectedLayer semantics, runtime gains folded in)
# --------------------------------------------------------------------------
def init_mlp_params(key, input_dim, hidden_dim, output_dim, lr_mul):
    """Matches FullyConnectedLayer.__init__ with the runtime gains folded in
    (weight_gain = lr_mul / sqrt(in), bias_gain = lr_mul). Weights kept in the
    natural PyTorch (out, in) layout."""
    k1, k2 = jax.random.split(key)
    w1_raw = jax.random.normal(k1, (hidden_dim, input_dim), jnp.float32) / lr_mul
    b1_raw = jnp.zeros((hidden_dim,), jnp.float32)
    w2_raw = jax.random.normal(k2, (1 + output_dim, hidden_dim), jnp.float32) / lr_mul
    b2_raw = jnp.zeros((1 + output_dim,), jnp.float32)

    w1_gain = lr_mul / jnp.sqrt(jnp.float32(input_dim))
    w2_gain = lr_mul / jnp.sqrt(jnp.float32(hidden_dim))

    return {
        "w1": w1_raw * w1_gain,     # (hidden_dim, input_dim)
        "b1": b1_raw * lr_mul,      # (hidden_dim,)
        "w2": w2_raw * w2_gain,     # (1+output_dim, hidden_dim)
        "b2": b2_raw * lr_mul,      # (1+output_dim,)
    }


def _reference_forward(point_features, params):
    """Pure-JAX f32 reference of the PyTorch forward."""
    N, M, C = point_features.shape
    x = point_features.reshape(N * M, C)
    h = x @ params["w1"].T + params["b1"][None, :]
    h = jnp.where(h > 20.0, h, jnp.log1p(jnp.exp(jnp.minimum(h, 20.0))))
    y = h @ params["w2"].T + params["b2"][None, :]
    y = y.reshape(N, M, -1)
    color = jax.nn.sigmoid(y[..., 1:]) * (1 + 2 * 0.001) - 0.001
    density = y[..., 0:1]
    return {"color": color, "density": density}


# --------------------------------------------------------------------------
# Self-test
# --------------------------------------------------------------------------
if __name__ == "__main__":
    # Small shapes consistent with the module: (N, M, C) point features.
    # N*M = 272 is deliberately NOT a multiple of any tile, so the un-padded
    # cdiv-grid edge-masking path is exercised (both the multi-tile partial
    # tail and the single oversized block).
    N, M = 2, 136
    input_dim, hidden_dim, output_dim = 32, 64, 3
    lr_mul = 0.25

    key = jax.random.PRNGKey(0)
    k_x, k_p = jax.random.split(key)

    point_features = jax.random.normal(k_x, (N, M, input_dim), jnp.float32)
    params = init_mlp_params(k_p, input_dim, hidden_dim, output_dim, lr_mul)

    ref = _reference_forward(point_features, params)

    def check(out, atol, rtol, tag):
        assert out["color"].shape == (N, M, output_dim), tag
        assert out["density"].shape == (N, M, 1), tag
        assert bool(jnp.isfinite(out["color"]).all()), tag
        assert bool(jnp.isfinite(out["density"]).all()), tag
        assert bool(jnp.allclose(out["color"], ref["color"],
                                 atol=atol, rtol=rtol)), tag
        assert bool(jnp.allclose(out["density"], ref["density"],
                                 atol=atol, rtol=rtol)), tag

    # 1) Exact f32 path, multi-tile grid with a partial tail block
    #    (272 = 2*128 + 16): validates edge masking tightly.
    out_f32_small = jax.jit(functools.partial(
        mlp_network_forward, tm=128, matmul_dtype=None,
        ew_dtype=jnp.float32))(point_features, params)
    jax.block_until_ready(out_f32_small)
    check(out_f32_small, 1e-4, 1e-4, "f32 multi-tile")

    # 2) Exact f32 path with the default tile selection (single block > NM).
    out_f32_big = jax.jit(functools.partial(
        mlp_network_forward, matmul_dtype=None,
        ew_dtype=jnp.float32))(point_features, params)
    jax.block_until_ready(out_f32_big)
    check(out_f32_big, 1e-4, 1e-4, "f32 default-tile")

    # 3) Default performance configuration: bf16 MXU operands (cast fused in
    #    the kernel), bf16 elementwise on v6e/v7x. Looser tolerance.
    out_fast = jax.jit(mlp_network_forward)(point_features, params)
    jax.block_until_ready(out_fast)
    check(out_fast, 1e-1, 1e-1, "bf16 default")

    print("KERNEL_OK")
</pallas_src>

<mosaic_0001>
module attributes {stable_mosaic.version = 11 : i64} {
  func.func @_mlp_kernel(%arg0: i32, %arg1: memref<128x32xf32, #tpu.memory_space<vmem>>, %arg2: memref<64x32xf32, #tpu.memory_space<vmem>>, %arg3: memref<64x1xf32, #tpu.memory_space<vmem>>, %arg4: memref<4x64xf32, #tpu.memory_space<vmem>>, %arg5: memref<4x1xf32, #tpu.memory_space<vmem>>, %arg6: memref<4x128xf32, #tpu.memory_space<vmem>>) attributes {dimension_semantics = [#tpu.dimension_semantics<parallel>], iteration_bounds = array<i64: 3>, scalar_prefetch = 0 : i64, scratch_operands = 0 : i64, tpu.core_type = #tpu.core_type<tc>, window_params = [{transform_indices = @transform_0, window_bounds = array<i64: 128, 32>}, {pipeline_mode = #tpu.pipeline_mode<synchronous>, transform_indices = @transform_1, window_bounds = array<i64: 64, 32>}, {pipeline_mode = #tpu.pipeline_mode<synchronous>, transform_indices = @transform_2, window_bounds = array<i64: 64, 1>}, {pipeline_mode = #tpu.pipeline_mode<synchronous>, transform_indices = @transform_3, window_bounds = array<i64: 4, 64>}, {pipeline_mode = #tpu.pipeline_mode<synchronous>, transform_indices = @transform_4, window_bounds = array<i64: 4, 1>}, {transform_indices = @transform_5, window_bounds = array<i64: 4, 128>}]} {
    %c0 = arith.constant 0 : index
    %c0_0 = arith.constant 0 : index
    %0 = vector.load %arg1[%c0, %c0_0] : memref<128x32xf32, #tpu.memory_space<vmem>>, vector<128x32xf32>
    %c0_1 = arith.constant 0 : index
    %c0_2 = arith.constant 0 : index
    %1 = vector.load %arg2[%c0_1, %c0_2] : memref<64x32xf32, #tpu.memory_space<vmem>>, vector<64x32xf32>
    %cst = arith.constant dense<0.000000e+00> : vector<64x128xf32>
    %2 = tpu.matmul %1, %0, %cst {dimension_numbers = #tpu.dot_dimension_numbers<[1], [1], [0], [0], [0, 0, 1, 0], [], []>} : vector<64x32xf32>, vector<128x32xf32>, vector<64x128xf32> -> vector<64x128xf32>
    %c0_3 = arith.constant 0 : index
    %c0_4 = arith.constant 0 : index
    %3 = vector.load %arg3[%c0_3, %c0_4] : memref<64x1xf32, #tpu.memory_space<vmem>>, vector<64x1xf32>
    %4 = vector.broadcast %3 : vector<64x1xf32> to vector<64x128xf32>
    %5 = arith.addf %2, %4 : vector<64x128xf32>
    %cst_5 = arith.constant 2.000000e+01 : f32
    %6 = vector.broadcast %cst_5 : f32 to vector<64x128xf32>
    %7 = arith.cmpf ogt, %5, %6 : vector<64x128xf32>
    %cst_6 = arith.constant 2.000000e+01 : f32
    %8 = vector.broadcast %cst_6 : f32 to vector<64x128xf32>
    %9 = arith.minimumf %5, %8 : vector<64x128xf32>
    %10 = math.exp %9 : vector<64x128xf32>
    %11 = math.log1p %10 : vector<64x128xf32>
    %12 = arith.select %7, %5, %11 : vector<64x128xi1>, vector<64x128xf32>
    %c0_7 = arith.constant 0 : index
    %c0_8 = arith.constant 0 : index
    %13 = vector.load %arg4[%c0_7, %c0_8] : memref<4x64xf32, #tpu.memory_space<vmem>>, vector<4x64xf32>
    %cst_9 = arith.constant dense<0.000000e+00> : vector<4x128xf32>
    %14 = tpu.matmul %13, %12, %cst_9 {dimension_numbers = #tpu.dot_dimension_numbers<[1], [0], [0], [1], [0, 0, 1, 1], [], []>} : vector<4x64xf32>, vector<64x128xf32>, vector<4x128xf32> -> vector<4x128xf32>
    %c0_10 = arith.constant 0 : index
    %c0_11 = arith.constant 0 : index
    %15 = vector.load %arg5[%c0_10, %c0_11] : memref<4x1xf32, #tpu.memory_space<vmem>>, vector<4x1xf32>
    %16 = vector.broadcast %15 : vector<4x1xf32> to vector<4x128xf32>
    %17 = arith.addf %14, %16 : vector<4x128xf32>
    %18 = vector.extract_strided_slice %17 {offsets = [0, 0], sizes = [1, 128], strides = [1, 1]} : vector<4x128xf32> to vector<1x128xf32>
    %c0_12 = arith.constant 0 : index
    %c0_13 = arith.constant 0 : index
    %19 = vector.load %arg6[%c0_12, %c0_13] : memref<4x128xf32, #tpu.memory_space<vmem>>, vector<1x128xf32>
    tpu.vector_store %arg6[%c0_12, %c0_13], %18 {strides = array<i32>} : memref<4x128xf32, #tpu.memory_space<vmem>>, vector<1x128xf32>,
    %20 = vector.extract_strided_slice %17 {offsets = [1, 0], sizes = [3, 128], strides = [1, 1]} : vector<4x128xf32> to vector<3x128xf32>
    %21 = arith.negf %20 : vector<3x128xf32>
    %22 = math.exp %21 : vector<3x128xf32>
    %cst_14 = arith.constant 1.000000e+00 : f32
    %23 = vector.broadcast %cst_14 : f32 to vector<3x128xf32>
    %24 = arith.addf %23, %22 : vector<3x128xf32>
    %25 = arith.divf %23, %24 : vector<3x128xf32>
    %cst_15 = arith.constant 1.002000e+00 : f32
    %26 = vector.broadcast %cst_15 : f32 to vector<3x128xf32>
    %27 = arith.mulf %25, %26 : vector<3x128xf32>
    %cst_16 = arith.constant 1.000000e-03 : f32
    %28 = vector.broadcast %cst_16 : f32 to vector<3x128xf32>
    %29 = arith.subf %27, %28 : vector<3x128xf32>
    %c1 = arith.constant 1 : index
    %c0_17 = arith.constant 0 : index
    %30 = vector.load %arg6[%c1, %c0_17] : memref<4x128xf32, #tpu.memory_space<vmem>>, vector<3x128xf32>
    tpu.vector_store %arg6[%c1, %c0_17], %29 {strides = array<i32>} : memref<4x128xf32, #tpu.memory_space<vmem>>, vector<3x128xf32>,
    return
  }
  func.func @transform_0(%arg0: i32) -> (i32, i32) {
    %c0_i32 = arith.constant 0 : i32
    %c0_i32_0 = arith.constant 0 : i32
    return %arg0, %c0_i32 : i32, i32
  }
  func.func @transform_1(%arg0: i32) -> (i32, i32) {
    %c0_i32 = arith.constant 0 : i32
    %c0_i32_0 = arith.constant 0 : i32
    %c0_i32_1 = arith.constant 0 : i32
    return %c0_i32, %c0_i32_0 : i32, i32
  }
  func.func @transform_2(%arg0: i32) -> (i32, i32) {
    %c0_i32 = arith.constant 0 : i32
    %c0_i32_0 = arith.constant 0 : i32
    %c0_i32_1 = arith.constant 0 : i32
    return %c0_i32, %c0_i32_0 : i32, i32
  }
  func.func @transform_3(%arg0: i32) -> (i32, i32) {
    %c0_i32 = arith.constant 0 : i32
    %c0_i32_0 = arith.constant 0 : i32
    %c0_i32_1 = arith.constant 0 : i32
    return %c0_i32, %c0_i32_0 : i32, i32
  }
  func.func @transform_4(%arg0: i32) -> (i32, i32) {
    %c0_i32 = arith.constant 0 : i32
    %c0_i32_0 = arith.constant 0 : i32
    %c0_i32_1 = arith.constant 0 : i32
    return %c0_i32, %c0_i32_0 : i32, i32
  }
  func.func @transform_5(%arg0: i32) -> (i32, i32) {
    %c0_i32 = arith.constant 0 : i32
    %c0_i32_0 = arith.constant 0 : i32
    return %c0_i32, %arg0 : i32, i32
  }
}

</mosaic_0001>

<bundles_post_ra>
// kernel: squeeze.0
= control target key start
LH: loop header
LB: loop body
LE: loop exit
PB: predicated region body
PF: predicated region fallthrough
CT: control target
= control target key end

     0   :  { %s126_s0 = inlined_call_operand.vmem [shape: f32[272], index: 0, kind: input, shape index: {}]   ;;  %s127_s1 = inlined_call_operand.hbm [shape: f32[2,136,1], index: 1, kind: output, shape index: {}]  }
   0x1   :  { %v5_v0 = vld [vmem:[%s126_s0] sm:$0xf] }
   0x2   :  { %6 = vst [vmem:[#allocation3] sm:$0xf] %v5_v0 }
   0x3   :  { %2 = vsyncpa [#allocation1], 0  ;;  %vm9_vm0 = vcmask 64512   ;;  %s96_s0 = smov 120   ;;  %vm25_vm1 = vcmask 1048512   ;;  %vm32_vm2 = vcmask 982016  }
   0x4   :  { %s97_s8 = smov [#allocation0]  }
   0x5   :  { %s62_s9 = sshll.u32 %s97_s8, 4  ;;  %s63_s9 = int_to_ptr.vmem [resolvable:$true] %s62_s9 }
   0x6   :  { %s72_s10 = scalar_lea.vmem %s63_s9, 64  ;;  %p77_p1 = scmp.lt.s32.totalorder %s63_s9, %s63_s9 }
   0x7   :  { %p73_p0 = scmp.ne.s32.totalorder %s63_s9, %s72_s10  ;;  %p78_p2 = scmp.lt.s32.totalorder %s72_s10, %s72_s10 }
   0x9   :  { %v15_v1 = vld [vmem:[#allocation3 + $0x2] sm:$0x1]   ;;  %v8_v3 = vld [vmem:[#allocation3 + $0x1] sm:$0x1]   ;;  %v12_v5 = vld [vmem:[#allocation3] sm:$0x1]   ;;  %p79_p3 = por %p78_p2, %p77_p1 }
   0xa   :  { %v17_v2 = vld [vmem:[#allocation3 + $0x2] sm:$0x1]   ;;  %11 = vst.msk [vmem:[#allocation2 + $0x8] sm:$0x1] %vm9_vm0, %v8_v3   ;;  %13 = vst [vmem:[#allocation2] sm:$0x1] %v12_v5  }
   0xb   :  { %v19_v4 = vsel %vm9_vm0, %v17_v2, %v15_v1  ;;  %v29_v6 = vld [vmem:[#allocation3 + $0x1] sm:$0x1]   ;;  %p80_p4 = pnand %p79_p3, %p73_p0 }
   0xc   :  { %20 = vrot.lane.b32.xlu0 %v19_v4, %s96_s0 }
  0x10   :  { %30 = vrot.lane.b32.xlu0 %v29_v6, %s96_s0 }
  0x11   :  { %v42_v7 = vld [vmem:[#allocation2 + $0x8] sm:$0x1]  ;;  %v38_v8 = vld [vmem:[#allocation2] sm:$0x1] }
  0x12   :  { %45 = vst [vmem:[#allocation0 + $0x1] sm:$0x1] %v42_v7  ;;  %40 = vst [vmem:[#allocation0] sm:$0x1] %v38_v8 }
  0x7e   :  { %v21_v9 = vpop.permute.xlu0 %20  }
  0x7f   :  { %24 = vst.msk [vmem:[#allocation2 + $0x18] sm:$0x1] %vm9_vm0, %v21_v9  }
  0x80   :  { %27 = vst.msk [vmem:[#allocation2 + $0x10] sm:$0x1] %vm25_vm1, %v21_v9  }
  0x82   :  { %v31_v10 = vpop.permute.xlu0 %30  }
  0x83   :  { %34 = vst.msk [vmem:[#allocation2 + $0x10] sm:$0x1] %vm32_vm2, %v31_v10  }
  0x86   :  { %v53_v11 = vld [vmem:[#allocation2 + $0x18] sm:$0x1] }
  0x87   :  { %57 = vst [vmem:[#allocation0 + $0x3] sm:$0x1] %v53_v11 }
  0x8a   :  { %v47_v12 = vld [vmem:[#allocation2 + $0x10] sm:$0x1] }
  0x8b   :  { %51 = vst [vmem:[#allocation0 + $0x2] sm:$0x1] %v47_v12 }
  0x8c   :  { %83 = shalt.err (!%p80_p4)
}
  0x8d   :  { %s84_s13 = scalar_lea.hbm %s127_s1, 64 }
  0x8e   :  { %p85_p5 = scmp.ne.s32.totalorder %s127_s1, %s84_s13  ;;  %p88_p6 = scmp.lt.u32.totalorder %s84_s13, %s127_s1 }
  0x90   :  { %p90_p7 = pnand %p88_p6, %p85_p5 }
  0x92   :  { %93 = shalt.err (!%p90_p7)
}
  0x93   :  { %65 = dma.vmem_to_hbm [thread:$0]  %s63_s9, 64, %s127_s1, [#allocation1]  }
  0x94   :  { %94 = dma.done.wait [#allocation1], 64  }
  0x95   :  { %95 = vsyncadd [#allocation1], 4294967232 }
  0x96   :  { %67 = vsyncpa [#allocation1], 1 }

// kernel: mlp_network_forward.1
= control target key start
LH: loop header
LB: loop body
LE: loop exit
PB: predicated region body
PF: predicated region fallthrough
CT: control target
= control target key end

     0   :  { %s1036_s18 = smov 0   ;;  %s1270_s0 = inlined_call_operand.vmem [shape: f32[272,32], index: 0, kind: input, shape index: {}]   ;;  %s1271_s1 = inlined_call_operand.vmem [shape: f32[64,32], index: 1, kind: input, shape index: {}]   ;;  %s1272_s2 = inlined_call_operand.vmem [shape: f32[64,1], index: 2, kind: input, shape index: {}]   ;;  %s1273_s3 = inlined_call_operand.vmem [shape: f32[4,64], index: 3, kind: input, shape index: {}]   ;;  %s1274_s4 = inlined_call_operand.vmem [shape: f32[4,1], index: 4, kind: input, shape index: {}]   ;;  %s1275_s5 = inlined_call_operand.vmem [shape: f32[4,272], index: 5, kind: output, shape index: {}]  }
   0x1 LB: > { %s1042_s19 = sadd.s32 4294967295, %s1000_s18   ;;  %p755_p0 = scmp.ge.s32.totalorder %s1000_s18, 1  ;;  %s1000_s18 = sphi %s1036_s18, %s15_s18  }
   0x2   : > { %p196_p1 = scmp.lt.s32.totalorder %s1000_s18, 4 }
   0x4   : > { %p197_p2 = pnand %p755_p0, %p196_p1 }
   0x5   : > { %s756_s20 = sshll.u32 (!%p197_p2), %s1042_s19, 4  ;;  %vm317_vm0 = vcmask (!%p197_p2), 261120   ;;  %v261_v0 = vld [vmem:[%s1271_s1] sm:$0xff] (!%p197_p2)  ;;  %v1002_v1 = vmov (!%p197_p2), 0   ;;  %v271_v3 = vld [vmem:[%s1272_s2 + $0x10] sm:$0xff] (!%p197_p2)  ;;  %v270_v4 = vld [vmem:[%s1272_s2 + $0x8] sm:$0xff] (!%p197_p2) }
   0x6   : > { %200 = sbr.rel (%p197_p2) target bundleno = 593 (0x251), region = 40  ;;  %p232_p3 = scmp.lt.s32.totalorder (!%p197_p2), %s756_s20, 33  ;;  %853 = vmatprep.mubr.msk.f32.mxu0 (!%p197_p2), %vm317_vm0, %v261_v0  ;;  %956 = vset.pattern.permute.xlu0 (!%p197_p2), %v1002_v1  ;;  %v269_v2 = vld [vmem:[%s1272_s2] sm:$0xff] (!%p197_p2)  ;;  %v272_v5 = vld [vmem:[%s1272_s2 + $0x18] sm:$0xff] (!%p197_p2)  ;;  %vm1070_vm1 = vmpackc.low (!%p197_p2), %vm317_vm0, %vm317_vm0  ;;  %v1003_v43 = vmov (!%p197_p2), 0.0|0.0   ;;  %vm1004_vm2 = vmmov (!%p197_p2), 0  }
   0x7   : > { %957 = vset.pattern.permute.xlu1 (!%p197_p2), %v1002_v1  ;;  %279 = vperm.xlu0 (!%p197_p2), %956, %v269_v2   ;;  %v273_v13 = vld [vmem:[%s1272_s2 + $0x20] sm:$0xff] (!%p197_p2)  ;;  %v274_v14 = vld [vmem:[%s1272_s2 + $0x28] sm:$0xff] (!%p197_p2)  ;;  %v275_v17 = vld [vmem:[%s1272_s2 + $0x30] sm:$0xff] (!%p197_p2)  ;;  %v1005_v44 = vmov (!%p197_p2), 0.0   ;;  %p241_p4 = scmp.lt.s32.totalorder (!%p197_p2), %s1042_s19, 2 }
   0x8   : > { %289 = vperm.xlu1 (!%p197_p2), %957, %v271_v3   ;;  %v276_v18 = vld [vmem:[%s1272_s2 + $0x38] sm:$0xff] (!%p197_p2)  ;;  %v608_v20 = vld [vmem:[%s1274_s4] sm:$0xf] (!%p197_p2)  ;;  %v262_v36 = vld [vmem:[%s1271_s1 + $0x8] sm:$0xff] (!%p197_p2)  ;;  %932 = vmatprep.subr.bf16.mxu1 (!%p197_p2), %v1003_v43 }
   0x9   : > { %v263_v37 = vld [vmem:[%s1271_s1 + $0x10] sm:$0xff] (!%p197_p2)  ;;  %v264_v38 = vld [vmem:[%s1271_s1 + $0x18] sm:$0xff] (!%p197_p2)  ;;  %v265_v39 = vld [vmem:[%s1271_s1 + $0x20] sm:$0xff] (!%p197_p2)  ;;  %881 = vmatprep.mubr.msk.f32.mxu1 (!%p197_p2), %vm1004_vm2, %v1005_v44 }
   0xa   : > { %v266_v40 = vld [vmem:[%s1271_s1 + $0x28] sm:$0xff] (!%p197_p2)  ;;  %v267_v41 = vld [vmem:[%s1271_s1 + $0x30] sm:$0xff] (!%p197_p2)  ;;  %v268_v42 = vld [vmem:[%s1271_s1 + $0x38] sm:$0xff] (!%p197_p2) }
   0xb   : > { %284 = vperm.xlu0 (!%p197_p2), %956, %v270_v4  }
   0xc   : > { %294 = vperm.xlu1 (!%p197_p2), %957, %v272_v5  }
   0xd   : > { %s1287_s20 = smov (!%p232_p3, %s756_s20), 33  ;;  %s1289_s19 = smov (!%p241_p4, %s1042_s19), 2 }
   0xe   : > { %s757_s27 = sshll.u32 %s1287_s20, 3  ;;  %s758_s13 = sshll.u32 %s1289_s19, 2 }
   0xf   : > { %s1066_s9 = scalar_lea.vmem %s1270_s0, %s757_s27  ;;  %299 = vperm.xlu0 %956, %v273_v13   ;;  %s244_s16 = scalar_lea.vmem %s1275_s5, %s758_s13 }
  0x10   : > { %v245_v7 = vld [vmem:[%s1066_s9] sm:$0xff]  ;;  %v246_v8 = vld [vmem:[%s1066_s9 + $0x8] sm:$0xff]  ;;  %v247_v9 = vld [vmem:[%s1066_s9 + $0x10] sm:$0xff]  ;;  %304 = vperm.xlu1 %957, %v274_v14  }
  0x11   : > { %v884_v10 = vpack.c.bf16 %v246_v8, %v245_v7  ;;  %v248_v11 = vld [vmem:[%s1066_s9 + $0x18] sm:$0xff]  ;;  %v249_v15 = vld [vmem:[%s1066_s9 + $0x20] sm:$0xff]  ;;  %v250_v16 = vld [vmem:[%s1066_s9 + $0x28] sm:$0xff] }
  0x12   : > { %v890_v12 = vpack.c.bf16 %v248_v11, %v247_v9  ;;  %v896_v19 = vpack.c.bf16 %v250_v16, %v249_v15  ;;  %v251_v21 = vld [vmem:[%s1066_s9 + $0x30] sm:$0xff]  ;;  %v252_v22 = vld [vmem:[%s1066_s9 + $0x38] sm:$0xff]  ;;  %v253_v24 = vld [vmem:[%s1066_s9 + $0x40] sm:$0xff] }
  0x13   : > { %886 = vmatprep.subr.msk.bf16.mxu0 %vm1070_vm1, %v884_v10  ;;  %309 = vperm.xlu0 %956, %v275_v17   ;;  %v902_v23 = vpack.c.bf16 %v252_v22, %v251_v21  ;;  %v254_v25 = vld [vmem:[%s1066_s9 + $0x48] sm:$0xff]  ;;  %v255_v27 = vld [vmem:[%s1066_s9 + $0x50] sm:$0xff]  ;;  %v256_v28 = vld [vmem:[%s1066_s9 + $0x58] sm:$0xff] }
  0x14   : > { %889 = vmatpush3.bf16.xpose.msk.msra.mxu0 %vm1070_vm1, %v884_v10  ;;  %314 = vperm.xlu1 %957, %v276_v18   ;;  %v908_v26 = vpack.c.bf16 %v254_v25, %v253_v24  ;;  %v914_v29 = vpack.c.bf16 %v256_v28, %v255_v27  ;;  %v257_v30 = vld [vmem:[%s1066_s9 + $0x60] sm:$0xff]  ;;  %v258_v31 = vld [vmem:[%s1066_s9 + $0x68] sm:$0xff]  ;;  %v259_v33 = vld [vmem:[%s1066_s9 + $0x70] sm:$0xff] }
  0x15   : > { %892 = vmatprep.subr.msk.bf16.mxu0 %vm1070_vm1, %v890_v12  ;;  %v920_v32 = vpack.c.bf16 %v258_v31, %v257_v30  ;;  %v260_v34 = vld [vmem:[%s1066_s9 + $0x78] sm:$0xff] }
  0x16   : > { %v926_v35 = vpack.c.bf16 %v260_v34, %v259_v33 }
  0x17   : > { %611 = vperm.xlu0 %956, %v608_v20  }
  0x1c   : > { %895 = vmatpush3.bf16.xpose.msk.msra.mxu0 %vm1070_vm1, %v890_v12 }
  0x1d   : > { %898 = vmatprep.subr.msk.bf16.mxu0 %vm1070_vm1, %v896_v19 }
  0x24   : > { %901 = vmatpush3.bf16.xpose.msk.msra.mxu0 %vm1070_vm1, %v896_v19 }
  0x25   : > { %904 = vmatprep.subr.msk.bf16.mxu0 %vm1070_vm1, %v902_v23 }
  0x2c   : > { %907 = vmatpush3.bf16.xpose.msk.msra.mxu0 %vm1070_vm1, %v902_v23 }
  0x2d   : > { %910 = vmatprep.subr.msk.bf16.mxu0 %vm1070_vm1, %v908_v26 }
  0x34   : > { %913 = vmatpush3.bf16.xpose.msk.msra.mxu0 %vm1070_vm1, %v908_v26 }
  0x35   : > { %916 = vmatprep.subr.msk.bf16.mxu0 %vm1070_vm1, %v914_v29 }
  0x3c   : > { %919 = vmatpush3.bf16.xpose.msk.msra.mxu0 %vm1070_vm1, %v914_v29 }
  0x3d   : > { %922 = vmatprep.subr.msk.bf16.mxu0 %vm1070_vm1, %v920_v32 }
  0x44   : > { %925 = vmatpush3.bf16.xpose.msk.msra.mxu0 %vm1070_vm1, %v920_v32 }
  0x45   : > { %928 = vmatprep.subr.msk.bf16.mxu0 %vm1070_vm1, %v926_v35 }
  0x4c   : > { %931 = vmatpush3.bf16.xpose.msk.msra.mxu0 %vm1070_vm1, %v926_v35 }
  0x53   : > { %854 = vmatmul.mubr.msk.f32.vlgmr.msra.gmra.mrb[0].mxu0 %vm317_vm0, %v262_v36 }
  0x54   : > { %856 = vmatprep.mubr.msk.f32.mxu0 %vm317_vm0, %v263_v37 }
  0x57   : > { %857 = vmatmul.mubr.msk.f32.gmra.mrb[2].mxu0 %vm317_vm0, %v264_v38 }
  0x58   : > { %859 = vmatprep.mubr.msk.f32.mxu0 %vm317_vm0, %v265_v39 }
  0x5b   : > { %860 = vmatmul.mubr.msk.f32.gmra.mrb[4].mxu0 %vm317_vm0, %v266_v40 }
  0x5c   : > { %862 = vmatprep.mubr.msk.f32.mxu0 %vm317_vm0, %v267_v41 }
  0x5f   : > { %863 = vmatmul.mubr.msk.f32.gmra.mrb[6].mxu0 %vm317_vm0, %v268_v42 }
  0x86   : > { %v280_v45 = vpop.permute.xlu0 %279 }
  0x87   : > { %v290_v46 = vpop.permute.xlu1 %289 }
  0x8a   : > { %v285_v47 = vpop.permute.xlu0 %284 }
  0x8b   : > { %v295_v48 = vpop.permute.xlu1 %294 }
  0x8e   : > { %v300_v62 = vpop.permute.xlu0 %299 }
  0x8f   : > { %v305_v59 = vpop.permute.xlu1 %304 }
  0x92   : > { %v310_v11 = vpop.permute.xlu0 %309 }
  0x93   : > { %v315_v8 = vpop.permute.xlu1 %314 }
 0x126   : > { %v855_v49 = vpop.f32.mrb[0].mxu0 }
 0x127   : > { %v1166_v50 = vadd.f32 %v855_v49, %v285_v47  ;;  %v456_v51 = vpop.f32.mrb[1].mxu0 }
 0x128   : > { %v1168_v52 = vadd.f32 %v456_v51, %v280_v45 }
 0x129   : > { %v504_v53 = vmin.f32 %v1166_v50, 20.0  ;;  %vm496_vm4 = vcmp.gt.f32.partialorder %v1166_v50, 20.0 }
 0x12a   : > { %v503_v54 = vmin.f32 %v1168_v52, 20.0  ;;  %v858_v55 = vpop.f32.mrb[2].mxu0  ;;  %vm495_vm3 = vcmp.gt.f32.partialorder %v1168_v52, 20.0 }
 0x12b   : > { %v513_v56 = vmul.f32 1.442695, %v504_v53  ;;  %v1172_v57 = vadd.f32 %v858_v55, %v295_v48  ;;  %v466_v58 = vpop.f32.mrb[3].mxu0 }
 0x12c   : > { %v511_v60 = vmul.f32 1.442695, %v503_v54  ;;  %v1174_v61 = vadd.f32 %v466_v58, %v290_v46 }
 0x12d   : > { %958 = vpow2.f32 %v513_v56  ;;  %v506_v63 = vmin.f32 %v1172_v57, 20.0  ;;  %vm498_vm5 = vcmp.gt.f32.partialorder %v1172_v57, 20.0 }
 0x12e   : > { %960 = vpow2.f32 %v511_v60  ;;  %v505_v0 = vmin.f32 %v1174_v61, 20.0  ;;  %v861_v1 = vpop.f32.mrb[4].mxu0  ;;  %vm497_vm6 = vcmp.gt.f32.partialorder %v1174_v61, 20.0 }
 0x12f   : > { %v517_v2 = vmul.f32 1.442695, %v506_v63  ;;  %v1178_v3 = vadd.f32 %v861_v1, %v305_v59  ;;  %v476_v4 = vpop.f32.mrb[5].mxu0 }
 0x130   : > { %v515_v5 = vmul.f32 1.442695, %v505_v0  ;;  %v1180_v6 = vadd.f32 %v476_v4, %v300_v62 }
 0x131   : > { %962 = vpow2.f32 %v517_v2  ;;  %v508_v7 = vmin.f32 %v1178_v3, 20.0  ;;  %vm500_vm12 = vcmp.gt.f32.partialorder %v1178_v3, 20.0 }
 0x132   : > { %964 = vpow2.f32 %v515_v5  ;;  %v507_v9 = vmin.f32 %v1180_v6, 20.0  ;;  %v864_v10 = vpop.f32.mrb[6].mxu0  ;;  %vm499_vm14 = vcmp.gt.f32.partialorder %v1180_v6, 20.0 }
 0x133   : > { %v521_v12 = vmul.f32 1.442695, %v508_v7  ;;  %v1184_v13 = vadd.f32 %v864_v10, %v315_v8  ;;  %v486_v14 = vpop.f32.mrb[7].mxu0 }
 0x134   : > { %v519_v15 = vmul.f32 1.442695, %v507_v9  ;;  %v1186_v16 = vadd.f32 %v486_v14, %v310_v11 }
 0x135   : > { %966 = vpow2.f32 %v521_v12  ;;  %v510_v17 = vmin.f32 %v1184_v13, 20.0  ;;  %vm502_vm0 = vcmp.gt.f32.partialorder %v1184_v13, 20.0 }
 0x136   : > { %968 = vpow2.f32 %v519_v15  ;;  %v509_v18 = vmin.f32 %v1186_v16, 20.0  ;;  %vm501_vm2 = vcmp.gt.f32.partialorder %v1186_v16, 20.0 }
 0x137   : > { %v959_v19 = vpop.eup %958  ;;  %v525_v20 = vmul.f32 1.442695, %v510_v17 }
 0x138   : > { %v961_v21 = vpop.eup %960  ;;  %v523_v22 = vmul.f32 1.442695, %v509_v18  ;;  %v536_v23 = vadd.f32 1.0, %v959_v19  ;;  %v539_v29 = vmul.f32 -0.5, %v959_v19  ;;  %v542_v34 = vand.u32 2147483647, %v959_v19 }
 0x139   : > { %970 = vpow2.f32 %v525_v20  ;;  %v527_v24 = vadd.f32 1.0, %v961_v21  ;;  %v530_v28 = vmul.f32 -0.5, %v961_v21  ;;  %v533_v37 = vand.u32 2147483647, %v961_v21 }
 0x13a   : > { %972 = vpow2.f32 %v523_v22  ;;  %v540_v38 = vadd.f32 1.0, %v539_v29  ;;  %vm1201_vm7 = vcmp.lt.f32.partialorder %v542_v34, 0.0004427343 }
 0x13b   : > { %v963_v25 = vpop.eup %962  ;;  %974 = vlog2.f32 %v527_v24  ;;  %v531_v36 = vadd.f32 1.0, %v530_v28  ;;  %vm1207_vm8 = vcmp.lt.f32.partialorder %v533_v37, 0.0004427343 }
 0x13c   : > { %v965_v26 = vpop.eup %964  ;;  %976 = vlog2.f32 %v536_v23  ;;  %v554_v27 = vadd.f32 1.0, %v963_v25  ;;  %v557_v32 = vmul.f32 -0.5, %v963_v25  ;;  %v560_v44 = vand.u32 2147483647, %v963_v25 }
 0x13d   : > { %v545_v30 = vadd.f32 1.0, %v965_v26  ;;  %v548_v40 = vmul.f32 -0.5, %v965_v26  ;;  %v532_v53 = vmul.f32 %v961_v21, %v531_v36  ;;  %v541_v55 = vmul.f32 %v959_v19, %v540_v38 }
 0x13e   : > { %978 = vlog2.f32 %v554_v27  ;;  %v558_v42 = vadd.f32 1.0, %v557_v32  ;;  %v551_v62 = vand.u32 2147483647, %v965_v26  ;;  %vm1212_vm9 = vcmp.lt.f32.partialorder %v560_v44, 0.0004427343 }
 0x13f   : > { %v967_v31 = vpop.eup %966  ;;  %980 = vlog2.f32 %v545_v30  ;;  %v549_v60 = vadd.f32 1.0, %v548_v40 }
 0x140   : > { %v1190_v33 = vpop.eup %968  ;;  %v572_v35 = vadd.f32 1.0, %v967_v31  ;;  %v575_v48 = vmul.f32 -0.5, %v967_v31  ;;  %v559_v0 = vmul.f32 %v963_v25, %v558_v42  ;;  %v578_v8 = vand.u32 2147483647, %v967_v31 }
 0x141   : > { %v563_v39 = vadd.f32 1.0, %v1190_v33  ;;  %v566_v47 = vmul.f32 -0.5, %v1190_v33  ;;  %v550_v18 = vmul.f32 %v965_v26, %v549_v60  ;;  %vm552_vm10 = vcmp.lt.f32.partialorder %v551_v62, 0.0004427343 }
 0x142   : > { %982 = vlog2.f32 %v572_v35  ;;  %v576_v7 = vadd.f32 1.0, %v575_v48  ;;  %v569_v22 = vand.u32 2147483647, %v1190_v33  ;;  %vm1234_vm11 = vcmp.lt.f32.partialorder %v578_v8, 0.0004427343 }
 0x143   : > { %v1195_v41 = vpop.eup %970  ;;  %984 = vlog2.f32 %v563_v39  ;;  %v567_v5 = vadd.f32 1.0, %v566_v47 }
 0x144   : > { %v1198_v45 = vpop.eup %972  ;;  %v590_v49 = vadd.f32 1.0, %v1195_v41  ;;  %v593_v14 = vmul.f32 -0.5, %v1195_v41  ;;  %v577_v25 = vmul.f32 %v967_v31, %v576_v7  ;;  %v596_v31 = vand.u32 2147483647, %v1195_v41 }
 0x145   : > { %v975_v51 = vpop.eup %974  ;;  %v581_v56 = vadd.f32 1.0, %v1198_v45  ;;  %v584_v19 = vmul.f32 -0.5, %v1198_v45  ;;  %v568_v28 = vmul.f32 %v1190_v33, %v567_v5  ;;  %vm570_vm13 = vcmp.lt.f32.partialorder %v569_v22, 0.0004427343 }
 0x146   : > { %v977_v58 = vpop.eup %976  ;;  %v529_v59 = vmul.f32 0.6931472, %v975_v51  ;;  %986 = vlog2.f32 %v590_v49  ;;  %v594_v30 = vadd.f32 1.0, %v593_v14  ;;  %v587_v36 = vand.u32 2147483647, %v1198_v45  ;;  %v612_v51 = vpop.permute.xlu0 %611 }
 0x147   : > { %v538_v63 = vmul.f32 0.6931472, %v977_v58  ;;  %988 = vlog2.f32 %v581_v56  ;;  %vm597_vm15 = vcmp.lt.f32.partialorder %v596_v31, 0.0004427343 }
 0x148   : > { %v979_v2 = vpop.eup %978  ;;  %v535_v4 = vsel %vm1207_vm8, %v532_v53, %v529_v59  ;;  %v595_v42 = vmul.f32 %v1195_v41, %v594_v30  ;;  %vm588_vm1 = vcmp.lt.f32.partialorder %v587_v36, 0.0004427343 }
 0x149   : > { %v981_v9 = vpop.eup %980  ;;  %v544_v10 = vsel %vm1201_vm7, %v541_v55, %v538_v63  ;;  %v599_v11 = vsel %vm495_vm3, %v1168_v52, %v535_v4  ;;  %v556_v12 = vmul.f32 0.6931472, %v979_v2  ;;  %vm614_vm3 = vcmask 523264  }
 0x14a   : > { %v600_v15 = vsel %vm496_vm4, %v1166_v50, %v544_v10  ;;  %v547_v17 = vmul.f32 0.6931472, %v981_v9 }
 0x14b   : > { %v933_v20 = vpack.c.bf16 %v600_v15, %v599_v11  ;;  %v562_v21 = vsel %vm1212_vm9, %v559_v0, %v556_v12 }
 0x14c   : > { %v983_v23 = vpop.eup %982  ;;  %v553_v52 = vsel %vm552_vm10, %v550_v18, %v547_v17  ;;  %v602_v24 = vsel %vm498_vm5, %v1172_v57, %v562_v21  ;;  %v585_v57 = vadd.f32 1.0, %v584_v19 }
 0x14d   : > { %v985_v26 = vpop.eup %984  ;;  %934 = vmatpush3.bf16.msra.mxu1 %v933_v20  ;;  %v601_v27 = vsel %vm497_vm6, %v1174_v61, %v553_v52  ;;  %v574_v29 = vmul.f32 0.6931472, %v983_v23 }
 0x14e   : > { %935 = vmatprep.subr.bf16.mxu1 %v1003_v43  ;;  %v936_v32 = vpack.c.bf16 %v602_v24, %v601_v27  ;;  %v565_v34 = vmul.f32 0.6931472, %v985_v26  ;;  %v586_v47 = vmul.f32 %v1198_v45, %v585_v57  ;;  %v607_v45 = vld [vmem:[%s1273_s3] sm:$0xf] }
 0x14f   : > { %v580_v35 = vsel %vm1234_vm11, %v577_v25, %v574_v29 }
 0x150   : > { %v987_v61 = vpop.eup %986  ;;  %v571_v33 = vsel %vm570_vm13, %v568_v28, %v565_v34  ;;  %v604_v37 = vsel %vm500_vm12, %v1178_v3, %v580_v35 }
 0x151   : > { %v989_v38 = vpop.eup %988  ;;  %937 = vmatpush3.bf16.msra.mxu1 %v936_v32  ;;  %v603_v39 = vsel %vm499_vm14, %v1180_v6, %v571_v33  ;;  %v592_v40 = vmul.f32 0.6931472, %v987_v61 }
 0x152   : > { %938 = vmatprep.subr.bf16.mxu1 %v1003_v43  ;;  %v939_v44 = vpack.c.bf16 %v604_v37, %v603_v39  ;;  %v583_v46 = vmul.f32 0.6931472, %v989_v38 }
 0x153   : > { %v598_v3 = vsel %vm597_vm15, %v595_v42, %v592_v40 }
 0x154   : > { %v589_v48 = vsel %vm588_vm1, %v586_v47, %v583_v46  ;;  %v606_v6 = vsel %vm502_vm0, %v1184_v13, %v598_v3 }
 0x155   : > { %940 = vmatpush3.bf16.msra.mxu1 %v939_v44  ;;  %v605_v41 = vsel %vm501_vm2, %v1186_v16, %v589_v48 }
 0x156   : > { %941 = vmatprep.subr.bf16.mxu1 %v1003_v43  ;;  %v942_v49 = vpack.c.bf16 %v606_v6, %v605_v41 }
 0x159   : > { %943 = vmatpush3.bf16.msra.mxu1 %v942_v49 }
 0x15c   : > { %882 = vmatmul.mubr.msk.f32.vlgmr.msra.gmra.mrb[0].mxu1 %vm614_vm3, %v607_v45 }
 0x22f   : > { %v684_v13 = vpop.f32.mrb[0].mxu1 }
 0x230   : > { %v685_v16 = vadd.f32 %v684_v13, %v612_v51  ;;  %v883_v53 = vpop.f32.mrb[1].mxu1 }
 0x232   : > { %688 = vst [vmem:[%s244_s16] sm:$0x1] %v685_v16  ;;  %v784_v43 = vmul.f32 -1.442695, %v685_v16 }
 0x234   : > { %990 = vpow2.f32 %v784_v43 }
 0x23e   : > { %v991_v54 = vpop.eup %990 }
 0x23f   : > { %v692_v55 = vadd.f32 1.0, %v991_v54 }
 0x241   : > { %992 = vrcp.f32 %v692_v55 }
 0x24b   : > { %v993_v56 = vpop.eup %992 }
 0x24c   : > { %v695_v58 = vmul.f32 1.002, %v993_v56 }
 0x24e   : > { %v785_v59 = vadd.f32 -0.001, %v695_v58 }
 0x250   : > { %697 = vst [vmem:[%s244_s16] sm:$0xe] %v785_v59 }
 0x251 PF: > { %s15_s18 = sadd.s32 1, %s1000_s18  }
 0x252   : > { %p12_p5 = scmp.ge.s32.totalorder %s15_s18, 5  }
 0x254   :  { %14 = sbr.rel (!%p12_p5) target bundleno = 1 (0x1), region = 70 }

</bundles_post_ra>
